<compile_context>
chip_gen: v7x
topology: tpu7x:2x2x1
jax: 0.10.0
libtpu: 0.0.40
codegen_flags: <defaults>
</compile_context>

<pallas_src>
import jax
import jax.numpy as jnp
from jax.experimental import pallas as pl
from jax.experimental.pallas import tpu as pltpu


def _round_up(x, m):
    return ((x + m - 1) // m) * m


def _round_down(x, m):
    return max(m, (x // m) * m)


def _mention_type_pluser_kernel(x_ref, ids_ref, emb_ref, out_ref):
    # x_ref   : (T, TH)   mention embedding tile (native dtype)
    # ids_ref : (T, 1)    int32 mention type ids (lane-pads to (T,128) in VMEM)
    # emb_ref : (Kp, TH)  embedding-table slab (rows padded to Kp, resident)
    # out_ref : (T, TH)
    t = x_ref.shape[0]
    kp = emb_ref.shape[0]
    ids = ids_ref[...]                                        # (T, 1) int32

    # One-hot gather on the MXU: table rows never selected by a valid id are
    # zero-padded, so they contribute nothing.
    iota = jax.lax.broadcasted_iota(jnp.int32, (t, kp), 1)
    one_hot = (ids == iota).astype(emb_ref.dtype)             # (T, Kp)
    type_emb = jnp.dot(one_hot, emb_ref[...],
                       preferred_element_type=jnp.float32)    # (T, TH) f32

    # Add in the input's native dtype (bf16 VALU on v6e/v7x; v5e upcasts).
    out_ref[...] = x_ref[...] + type_emb.astype(out_ref.dtype)


def mention_type_pluser(batch_mention_emb, mention_type_ids, embedding_weight,
                        *, row_tile=2048):
    """out[n, :] = batch_mention_emb[n, :] + embedding_weight[mention_type_ids[n], :]"""
    n, hidden = batch_mention_emb.shape
    num_types, hidden_w = embedding_weight.shape
    assert hidden == hidden_w

    out_dtype = batch_mention_emb.dtype
    x_elt = jnp.dtype(out_dtype).itemsize
    w_elt = jnp.dtype(embedding_weight.dtype).itemsize

    # --- hardware-derived VMEM budget (v7x: 64 MiB / TC; v5e/v6e: 128 MiB) --
    try:
        vmem_cap = int(pltpu.get_tpu_info().vmem_capacity_bytes)
    except Exception:
        vmem_cap = 64 * 1024 * 1024
    budget = int(vmem_cap * 0.45)

    # Sublane packing: 8 rows for f32, 16 for bf16, 32 for int8.
    row_align = max(8, 32 // max(1, x_elt))
    tbl_align = max(8, 32 // max(1, w_elt))
    num_types_pad = _round_up(num_types, tbl_align)

    def vmem_bytes(t, th):
        stream = 2 * 2 * t * th * x_elt                     # x + out, double buffered
        ids_b = 2 * t * 128 * 4                             # (T,1) int32 lane-pads to 128
        table = 2 * num_types_pad * th * w_elt              # resident table slab
        interm = t * th * (4 + x_elt)                       # f32 dot result + downcast
        interm += t * max(128, _round_up(num_types_pad, 128)) * w_elt  # one-hot
        return stream + ids_b + table + interm

    # --- hidden (lane) tiling: full H unless the table slab starves VMEM ----
    th = hidden
    while hidden > 128 and th > 128 and 2 * num_types_pad * th * w_elt > budget // 3:
        th = _round_up(th // 2, 128)
    # TODO(synk): for extremely large num_ment_types the (padded) table slab is
    # still fully resident; that case would need a tiled-K accumulator grid.

    # --- row tiling: as large as fits; >=2 steps so both v7x TCs get work ---
    tile = _round_up(max(row_align, int(row_tile)), row_align)
    while tile > row_align and vmem_bytes(tile, th) > budget:
        tile = _round_down(tile // 2, row_align)
    tile = min(tile, _round_up(n, row_align))
    if n >= 2048:
        tile = min(tile, _round_up(pl.cdiv(n, 2), row_align))

    est = vmem_bytes(tile, th)
    vmem_limit = int(min(int(vmem_cap * 0.75),
                         max(32 * 1024 * 1024, 2 * est)))

    # --- inputs: no N padding; the grid's partial last block handles the tail.
    # NOTE: PyTorch nn.Embedding raises on out-of-range ids; we clamp instead.
    ids2d = jnp.clip(jnp.asarray(mention_type_ids, jnp.int32),
                     0, num_types - 1).reshape(n, 1)
    emb = embedding_weight
    if num_types_pad != num_types:   # tiny one-time pad; padded rows never selected
        emb = jnp.pad(emb, ((0, num_types_pad - num_types), (0, 0)))

    grid = (pl.cdiv(n, tile), pl.cdiv(hidden, th))

    return pl.pallas_call(
        _mention_type_pluser_kernel,
        out_shape=jax.ShapeDtypeStruct((n, hidden), out_dtype),
        grid=grid,
        in_specs=[
            pl.BlockSpec((tile, th), lambda i, j: (i, j)),           # mention embeddings
            pl.BlockSpec((tile, 1), lambda i, j: (i, 0)),            # type ids column
            pl.BlockSpec((num_types_pad, th), lambda i, j: (0, j)),  # resident table slab
        ],
        out_specs=pl.BlockSpec((tile, th), lambda i, j: (i, j)),
        compiler_params=pltpu.CompilerParams(
            dimension_semantics=("parallel", "parallel"),
            vmem_limit_bytes=vmem_limit),
    )(batch_mention_emb, ids2d, emb)


if __name__ == "__main__":
    key = jax.random.PRNGKey(0)
    k_emb, k_x, k_ids = jax.random.split(key, 3)

    num_ment_types = 4
    hidden_size = 32
    num_mentions = 8   # "batch" of mentions

    # Deterministic synthetic parameters (nn.Embedding weight ~ N(0, 1)).
    embedding_weight = jax.random.normal(
        k_emb, (num_ment_types, hidden_size), dtype=jnp.float32)
    batch_mention_emb = jax.random.normal(
        k_x, (num_mentions, hidden_size), dtype=jnp.float32)
    mention_type_ids = jax.random.randint(
        k_ids, (num_mentions,), 0, num_ment_types, dtype=jnp.int32)

    out = jax.block_until_ready(
        mention_type_pluser(batch_mention_emb, mention_type_ids, embedding_weight))
    ref = batch_mention_emb + embedding_weight[mention_type_ids]
    assert out.shape == (num_mentions, hidden_size)
    assert jnp.allclose(out, ref, atol=1e-5, rtol=1e-5)

    # Non-divisible N: no wrapper pad / output slice, partial last block only.
    n2 = 37
    x2 = jax.random.normal(k_x, (n2, hidden_size), dtype=jnp.float32)
    ids2 = jax.random.randint(k_ids, (n2,), 0, num_ment_types, dtype=jnp.int32)
    out2 = jax.block_until_ready(mention_type_pluser(x2, ids2, embedding_weight))
    ref2 = x2 + embedding_weight[ids2]
    assert out2.shape == (n2, hidden_size)
    assert jnp.allclose(out2, ref2, atol=1e-5, rtol=1e-5)

    # bf16 path: native-dtype add, bf16 one-hot MXU gather with f32 accumulation.
    x3 = batch_mention_emb.astype(jnp.bfloat16)
    w3 = embedding_weight.astype(jnp.bfloat16)
    out3 = jax.block_until_ready(mention_type_pluser(x3, mention_type_ids, w3))
    ref3 = x3 + w3[mention_type_ids]
    assert out3.dtype == jnp.bfloat16
    assert jnp.allclose(out3.astype(jnp.float32), ref3.astype(jnp.float32),
                        atol=1e-2, rtol=1e-2)

    print("KERNEL_OK")
</pallas_src>

<mosaic_0001>
module attributes {stable_mosaic.version = 11 : i64} {
  func.func @_mention_type_pluser_kernel(%arg0: i32, %arg1: i32, %arg2: memref<8x32xf32, #tpu.memory_space<vmem>>, %arg3: memref<8x1xi32, #tpu.memory_space<vmem>>, %arg4: memref<8x32xf32, #tpu.memory_space<vmem>>, %arg5: memref<8x32xf32, #tpu.memory_space<vmem>>) attributes {dimension_semantics = [#tpu.dimension_semantics<parallel>, #tpu.dimension_semantics<parallel>], iteration_bounds = array<i64: 1, 1>, scalar_prefetch = 0 : i64, scratch_operands = 0 : i64, tpu.core_type = #tpu.core_type<tc>, window_params = [{transform_indices = @transform_0, window_bounds = array<i64: 8, 32>}, {transform_indices = @transform_1, window_bounds = array<i64: 8, 1>}, {transform_indices = @transform_2, window_bounds = array<i64: 8, 32>}, {transform_indices = @transform_3, window_bounds = array<i64: 8, 32>}]} {
    %c0 = arith.constant 0 : index
    %c0_0 = arith.constant 0 : index
    %0 = vector.load %arg3[%c0, %c0_0] : memref<8x1xi32, #tpu.memory_space<vmem>>, vector<8x1xi32>
    %1 = tpu.iota {dimensions = array<i32: 1>} : vector<8x8xi32>
    %2 = vector.broadcast %0 : vector<8x1xi32> to vector<8x8xi32>
    %3 = arith.cmpi eq, %2, %1 : vector<8x8xi32>
    %4 = arith.extui %3 : vector<8x8xi1> to vector<8x8xi32>
    %5 = arith.sitofp %4 : vector<8x8xi32> to vector<8x8xf32>
    %c0_1 = arith.constant 0 : index
    %c0_2 = arith.constant 0 : index
    %6 = vector.load %arg4[%c0_1, %c0_2] : memref<8x32xf32, #tpu.memory_space<vmem>>, vector<8x32xf32>
    %cst = arith.constant dense<0.000000e+00> : vector<8x32xf32>
    %7 = tpu.matmul %5, %6, %cst {dimension_numbers = #tpu.dot_dimension_numbers<[1], [0], [0], [1], [0, 0, 1, 1], [], []>} : vector<8x8xf32>, vector<8x32xf32>, vector<8x32xf32> -> vector<8x32xf32>
    %c0_3 = arith.constant 0 : index
    %c0_4 = arith.constant 0 : index
    %8 = vector.load %arg2[%c0_3, %c0_4] : memref<8x32xf32, #tpu.memory_space<vmem>>, vector<8x32xf32>
    %9 = arith.addf %8, %7 : vector<8x32xf32>
    %c0_5 = arith.constant 0 : index
    %c0_6 = arith.constant 0 : index
    %10 = vector.load %arg5[%c0_5, %c0_6] : memref<8x32xf32, #tpu.memory_space<vmem>>, vector<8x32xf32>
    tpu.vector_store %arg5[%c0_5, %c0_6], %9 {strides = array<i32>} : memref<8x32xf32, #tpu.memory_space<vmem>>, vector<8x32xf32>,
    return
  }
  func.func @transform_0(%arg0: i32, %arg1: i32) -> (i32, i32) {
    %c0_i32 = arith.constant 0 : i32
    return %arg0, %arg1 : i32, i32
  }
  func.func @transform_1(%arg0: i32, %arg1: i32) -> (i32, i32) {
    %c0_i32 = arith.constant 0 : i32
    %c0_i32_0 = arith.constant 0 : i32
    return %arg0, %c0_i32 : i32, i32
  }
  func.func @transform_2(%arg0: i32, %arg1: i32) -> (i32, i32) {
    %c0_i32 = arith.constant 0 : i32
    %c0_i32_0 = arith.constant 0 : i32
    return %c0_i32, %arg1 : i32, i32
  }
  func.func @transform_3(%arg0: i32, %arg1: i32) -> (i32, i32) {
    %c0_i32 = arith.constant 0 : i32
    return %arg0, %arg1 : i32, i32
  }
}

</mosaic_0001>

<bundles_post_ra>
// kernel: tpu_custom_call.1
= control target key start
LH: loop header
LB: loop body
LE: loop exit
PB: predicated region body
PF: predicated region fallthrough
CT: control target
= control target key end

     0   :  { %s200_s0 = inlined_call_operand.vmem [shape: f32[8,32], index: 0, kind: input, shape index: {}]   ;;  %s201_s1 = inlined_call_operand.vmem [shape: s32[8,1], index: 1, kind: input, shape index: {}]   ;;  %s202_s2 = inlined_call_operand.vmem [shape: f32[8,32], index: 2, kind: input, shape index: {}]   ;;  %s203_s3 = inlined_call_operand.hbm [shape: f32[8,32], index: 3, kind: output, shape index: {}]  }
   0x1   :  { %v15_v0 = vld [vmem:[%s201_s1] sm:$0xff] }
   0x2   :  { %8 = vsyncpa [#allocation3], 0  ;;  %v155_v1 = vmov 0   ;;  %v156_v2 = vmov 0.0   ;;  %v24_v3 = vld [vmem:[%s202_s2] sm:$0xff]  ;;  %vm157_vm0 = vmmov 0   ;;  %v16_v4 = vlaneseq }
   0x3   :  { %130 = vset.pattern.permute.xlu0 %v155_v1  ;;  %121 = vmatprep.subr.mxu0 %v156_v2  ;;  %vm25_vm1 = vcmask 64512   ;;  %v99_v8 = vld [vmem:[%s200_s0] sm:$0xff]  ;;  %s158_s17 = smov [#allocation2]   ;;  %vm101_vm3 = vcmask 261120  }
   0x4   :  { %19 = vperm.xlu0 %130, %v15_v0   ;;  %122 = vmatpush3.msra.mxu0 %v24_v3  ;;  %v17_v5 = vand.u32 127, %v16_v4  ;;  %s109_s18 = sshll.u32 %s158_s17, 4  ;;  %s110_s18 = int_to_ptr.vmem [resolvable:$true] %s109_s18 }
   0x5   :  { %123 = vmatprep.mubr.msk.f32.mxu0 %vm157_vm0, %v156_v2  ;;  %s131_s2 = scalar_lea.vmem %s110_s18, 128  ;;  %p136_p1 = scmp.lt.s32.totalorder %s110_s18, %s110_s18 }
   0x6   :  { %p132_p0 = scmp.ne.s32.totalorder %s110_s18, %s131_s2  ;;  %p137_p2 = scmp.lt.s32.totalorder %s131_s2, %s131_s2 }
   0x8   :  { %p138_p3 = por %p137_p2, %p136_p1 }
   0xa   :  { %p139_p4 = pnand %p138_p3, %p132_p0 }
  0x83   :  { %v20_v6 = vpop.permute.xlu0 %19 }
  0x84   :  { %vm21_vm2 = vcmp.eq.s32.totalorder %v20_v6, %v17_v5 }
  0x85   :  { %v117_v7 = vsel %vm21_vm2, 1.0, %v156_v2 }
  0x86   :  { %124 = vmatmul.mubr.msk.f32.vlgmr.msra.gmra.mrb[0].mxu0 %vm25_vm1, %v117_v7 }
 0x159   :  { %v95_v9 = vpop.f32.mrb[0].mxu0 }
 0x15a   :  { %v100_v10 = vadd.f32 %v99_v8, %v95_v9  ;;  %v125_v11 = vpop.f32.mrb[1].mxu0 }
 0x15c   :  { %102 = vst.msk [vmem:[#allocation2] sm:$0xff] %vm101_vm3, %v100_v10 }
 0x15d   :  { %142 = shalt.err (!%p139_p4)
}
 0x15e   :  { %s143_s21 = scalar_lea.hbm %s203_s3, 128 }
 0x15f   :  { %p144_p5 = scmp.ne.s32.totalorder %s203_s3, %s143_s21  ;;  %p147_p6 = scmp.lt.u32.totalorder %s143_s21, %s203_s3 }
 0x161   :  { %p149_p7 = pnand %p147_p6, %p144_p5 }
 0x163   :  { %152 = shalt.err (!%p149_p7)
}
 0x164   :  { %112 = dma.vmem_to_hbm [thread:$0]  %s110_s18, 128, %s203_s3, [#allocation3]  }
 0x165   :  { %153 = dma.done.wait [#allocation3], 128  }
 0x166   :  { %154 = vsyncadd [#allocation3], 4294967168 }
 0x167   :  { %116 = vsyncpa [#allocation3], 1 }

</bundles_post_ra>
